<compile_context>
chip_gen: v7x
topology: tpu7x:2x2x1
jax: 0.10.0
libtpu: 0.0.40
codegen_flags: <defaults>
</compile_context>

<pallas_src>
import math
from functools import partial

import jax
import jax.numpy as jnp
from jax.experimental import pallas as pl
from jax.experimental.pallas import tpu as pltpu


# ----------------------------- helpers ---------------------------------------

_LANE = 128


def _round_up(x, m):
    return -(-x // m) * m


def _padded_block_bytes(shape, dtype):
    """Approx VMEM footprint of one buffer (last two dims tiled (sublane,128))."""
    itemsize = jnp.dtype(dtype).itemsize
    sub = {4: 8, 2: 16, 1: 32}.get(itemsize, 8)
    dims = list(shape)
    if len(dims) >= 2:
        dims[-2] = _round_up(dims[-2], sub)
        dims[-1] = _round_up(dims[-1], _LANE)
    elif len(dims) == 1:
        dims[-1] = _round_up(dims[-1], _LANE)
    n = 1
    for d in dims:
        n *= d
    return n * itemsize


def _divisors_desc(n):
    return [d for d in range(n, 0, -1) if n % d == 0]


def _vmem_budget_and_cap():
    """Generation-aware block budget + physical VMEM capacity."""
    cap = 64 * 1024 * 1024                     # conservative fallback (v7x-class)
    try:
        info = pltpu.get_tpu_info()
        cap = int(getattr(info, "vmem_capacity_bytes", cap))
    except Exception:
        pass
    budget = 24 * 1024 * 1024 if cap <= 64 * 1024 * 1024 else 48 * 1024 * 1024
    return budget, cap


def _vmem_limit(est, cap):
    """Scoped VMEM limit tied to the actual estimate, never near physical cap."""
    want = max(32 * 1024 * 1024, int(1.25 * est) + (2 << 20))
    return int(min(want, max(cap - (8 << 20), 32 << 20)))


def _num_tensorcores():
    """Best-effort TensorCores-per-device (megacore); default 1 if unknown."""
    try:
        d = jax.devices()[0]
        for attr in ("num_cores", "core_count", "num_tensorcores"):
            v = getattr(d, attr, None)
            if isinstance(v, int) and v > 0:
                return v
    except Exception:
        pass
    return 1


def _pick_row_tile(R, usage_fn, budget, *, max_tile=None, row_multiple=1,
                   min_steps=1):
    """Largest TR dividing R with usage<=budget, TR%row_multiple==0 (or TR==R)."""
    def ok_shape(d):
        return (d % row_multiple == 0) or (d == R)

    cands = [d for d in _divisors_desc(R)
             if ok_shape(d) and (max_tile is None or d <= max_tile)]
    if not cands:
        cands = [R]                     # full-extent block is always legal
    tr = None
    for d in cands:                     # descending: largest fitting the budget
        if usage_fn(d) <= budget:
            tr = d
            break
    if tr is None:
        tr = cands[-1]
    if min_steps > 1 and R // tr < min_steps:
        for d in cands:
            if R // d >= min_steps and usage_fn(d) <= budget:
                tr = d
                break
    return tr


# ----------------------------- kernels ----------------------------------------


def _pool_kernel(x_ref, o_ref, *, s, D, is_max, scale, chunk):
    """avg/max pool.  x_ref: (TR, s, Wo, s*D)   o_ref: (TR, Wo, D).

    Vectorized: s*s slab ops of shape (chunk, Wo, D) per chunk; `chunk` is
    sized so acc+tap stay within the vector register file (no giant spills).
    """
    TR = o_ref.shape[0]
    for c0 in range(0, TR, chunk):            # short static unroll over chunks
        n = min(chunk, TR - c0)
        rows = pl.ds(c0, n)
        acc = None
        for kh in range(s):
            for kw in range(s):
                tap = x_ref[rows, kh, :, pl.ds(kw * D, D)]        # (n, Wo, D)
                if not is_max:
                    tap = tap.astype(jnp.float32)                 # f32 accumulate
                if acc is None:
                    acc = tap
                elif is_max:
                    acc = jnp.maximum(acc, tap)                   # exact in any dtype
                else:
                    acc = acc + tap
        if not is_max:
            acc = acc * scale
        o_ref[rows] = acc.astype(o_ref.dtype)


def _conv_kernel(x_ref, w_ref, b_ref, o_ref, lhs_ref, *, s, Wo, D):
    """Non-overlapping s x s conv == bf16 im2col + one MXU GEMM, direct write.

    x_ref:   (TR, s, Wo, s*D)   activation block
    w_ref:   (K, Cout)          bf16 weight, resident across the grid
    b_ref:   (1, Cout)          f32 bias, resident
    o_ref:   (TR*Wo, Cout)      dense 2-D output block
    lhs_ref: (TR*Wo, K)         bf16 im2col scratch
    """
    TR = x_ref.shape[0]
    sD = s * D
    # im2col: output pixel (r, j) -> lhs row r*Wo + j, lanes ordered (kh, kw, cin)
    # to match the flattened PyTorch OIHW weight.  All slices contiguous/static.
    for r in range(TR):
        for kh in range(s):
            lhs_ref[pl.ds(r * Wo, Wo), pl.ds(kh * sD, sD)] = (
                x_ref[r, kh].astype(lhs_ref.dtype))
    # One large-M GEMM, bf16 operands, f32 accumulation, fused bias, direct store.
    y = jnp.dot(lhs_ref[...], w_ref[...], preferred_element_type=jnp.float32)
    o_ref[...] = (y + b_ref[...]).astype(o_ref.dtype)


# ----------------------------- wrapper ----------------------------------------


def llava_next_video_pooler(image_features, *, mode="average", stride=2,
                            conv_weight=None, conv_bias=None):
    """image_features: (B, S, D) with S a perfect square.

    conv_weight is PyTorch OIHW (Cout, Cin, s, s), conv_bias is (Cout,).
    Returns (B, Ho*Wo, C) matching the PyTorch module's forward.
    """
    B, S, D = image_features.shape
    H = int(math.isqrt(S))
    W = H
    assert H * W == S, "sequence length must be a perfect square"
    s = int(stride)
    Ho, Wo = H // s, W // s
    assert Ho > 0 and Wo > 0, "stride larger than the spatial extent"
    sD = s * D
    R = B * Ho
    in_dtype = image_features.dtype
    itemsize = jnp.dtype(in_dtype).itemsize

    # .view(B, H, W, D); floor-crop (matches torch pooling) if needed, then view
    # as (R, s, Wo, s*D).  Contiguous-dim splits/merges only -> no HBM copy
    # (unless an actual crop is required, which materializes one copy).
    x4 = image_features.reshape(B, H, W, D)
    if (Ho * s != H) or (Wo * s != W):
        x4 = x4[:, : Ho * s, : Wo * s, :]
    xv = x4.reshape(R, s, Wo, sD)

    budget, vmem_cap = _vmem_budget_and_cap()
    cores = _num_tensorcores()

    def in_block_bytes(TR):
        return _padded_block_bytes((TR, s, Wo, sD), in_dtype)

    if mode in ("average", "max"):
        # chunk sized so (acc + tap) in f32 stays comfortably inside the vregs.
        chunk = max(1, 12288 // max(1, Wo * D))

        def usage(TR):
            return (2 * in_block_bytes(TR)
                    + 2 * _padded_block_bytes((TR, Wo, D), in_dtype))

        TR = _pick_row_tile(R, usage, budget, max_tile=64 * chunk,
                            min_steps=min(cores, R))
        est = usage(TR)
        kernel = partial(_pool_kernel, s=s, D=D, is_max=(mode == "max"),
                         scale=1.0 / float(s * s), chunk=min(chunk, TR))
        out3 = pl.pallas_call(
            kernel,
            out_shape=jax.ShapeDtypeStruct((R, Wo, D), in_dtype),
            grid=(R // TR,),
            in_specs=[pl.BlockSpec((TR, s, Wo, sD), lambda r: (r, 0, 0, 0))],
            out_specs=pl.BlockSpec((TR, Wo, D), lambda r: (r, 0, 0)),
            compiler_params=pltpu.CompilerParams(
                dimension_semantics=("parallel",),
                vmem_limit_bytes=_vmem_limit(est, vmem_cap)),
            cost_estimate=pl.CostEstimate(
                flops=R * Wo * D * s * s,
                transcendentals=0,
                bytes_accessed=(R * s * Wo * sD + R * Wo * D) * itemsize),
        )(xv)
        return out3.reshape(B, Ho * Wo, D)            # free contiguous merge

    elif mode == "conv":
        assert conv_weight is not None and conv_bias is not None
        Cout = conv_weight.shape[0]
        K = s * s * D
        # OIHW (Cout, Cin, kh, kw) -> (kh, kw, cin) x Cout GEMM weight, bf16 once.
        w2 = jnp.transpose(conv_weight, (2, 3, 1, 0)).reshape(K, Cout)
        w2 = w2.astype(jnp.bfloat16)
        b2 = conv_bias.reshape(1, Cout).astype(jnp.float32)

        w_bytes = _padded_block_bytes((K, Cout), jnp.bfloat16)
        bias_bytes = _padded_block_bytes((1, Cout), jnp.float32)

        def _const_spec(shape, single):
            idx = lambda r: (0, 0)
            if single:
                try:
                    return pl.BlockSpec(shape, idx,
                                        pipeline_mode=pl.Buffered(1)), 1
                except Exception:
                    pass
            return pl.BlockSpec(shape, idx), 2

        # Single-buffer the grid-resident weight only when it is big enough for
        # the saved VMEM to matter (keeps the small-weight path maximally safe).
        w_spec, w_bufs = _const_spec((K, Cout), single=(w_bytes >= (2 << 20)))
        b_spec, _ = _const_spec((1, Cout), single=False)

        row_mult = 8 // math.gcd(Wo, 8)               # M = TR*Wo multiple of 8

        def usage(TR):
            M = TR * Wo
            return (2 * in_block_bytes(TR)
                    + 2 * _padded_block_bytes((M, Cout), in_dtype)
                    + w_bufs * w_bytes + 2 * bias_bytes
                    + _padded_block_bytes((M, K), jnp.bfloat16))

        # Bound Python unroll (TR*s im2col stores) and the single-GEMM M.
        max_tr = max(1, min(64, 1024 // max(1, Wo)))
        min_steps = cores if (cores > 1 and R * Wo >= 2 * 128) else 1
        TR = _pick_row_tile(R, usage, budget, max_tile=max_tr,
                            row_multiple=row_mult, min_steps=min_steps)
        M = TR * Wo
        est = usage(TR)
        kernel = partial(_conv_kernel, s=s, Wo=Wo, D=D)
        out2 = pl.pallas_call(
            kernel,
            out_shape=jax.ShapeDtypeStruct((R * Wo, Cout), in_dtype),
            grid=(R // TR,),
            in_specs=[pl.BlockSpec((TR, s, Wo, sD), lambda r: (r, 0, 0, 0)),
                      w_spec, b_spec],
            out_specs=pl.BlockSpec((M, Cout), lambda r: (r, 0)),
            scratch_shapes=[pltpu.VMEM((M, K), jnp.bfloat16)],   # bf16 im2col
            compiler_params=pltpu.CompilerParams(
                dimension_semantics=("parallel",),
                vmem_limit_bytes=_vmem_limit(est, vmem_cap)),
            cost_estimate=pl.CostEstimate(
                flops=2 * R * Wo * K * Cout,
                transcendentals=0,
                bytes_accessed=(R * s * Wo * sD * itemsize
                                + K * Cout * 2 + Cout * 4
                                + R * Wo * Cout * itemsize)),
        )(xv, w2, b2)
        return out2.reshape(B, Ho * Wo, Cout)         # free contiguous merge

    else:
        raise ValueError(f"Unknown pooling mode: {mode}")


# ----------------------------- reference & demo -------------------------------


if __name__ == "__main__":
    # Small, config-consistent shapes: vision hidden D=128,
    # (image_size // patch_size) = 8 -> S = 64, stride 2, Cout = hidden = 128.
    B, H, D, s = 2, 8, 128, 2
    S = H * H
    Cout = D

    key = jax.random.PRNGKey(0)
    k1, k2, k3 = jax.random.split(key, 3)
    x = jax.random.normal(k1, (B, S, D), dtype=jnp.float32)
    conv_w = jax.random.normal(k2, (Cout, D, s, s), dtype=jnp.float32) * 0.02  # OIHW
    conv_b = jax.random.normal(k3, (Cout,), dtype=jnp.float32) * 0.01

    def ref_pool(xx, mode):
        Ho = H // s
        xw = xx.reshape(B, H, H, D)[:, : Ho * s, : Ho * s, :]
        xw = xw.reshape(B, Ho, s, Ho, s, D)
        if mode == "average":
            return xw.mean(axis=(2, 4)).reshape(B, Ho * Ho, D)
        if mode == "max":
            return xw.max(axis=(2, 4)).reshape(B, Ho * Ho, D)
        patches = xw.transpose(0, 1, 3, 2, 4, 5).reshape(B, Ho * Ho, s * s * D)
        w_flat = jnp.transpose(conv_w, (2, 3, 1, 0)).reshape(s * s * D, Cout)
        return patches @ w_flat + conv_b

    ok = True
    for mode in ("average", "max", "conv"):
        out = llava_next_video_pooler(x, mode=mode, stride=s,
                                      conv_weight=conv_w, conv_bias=conv_b)
        out = jax.block_until_ready(out)
        ref = ref_pool(x, mode)
        tol = 2e-2 if mode == "conv" else 1e-5   # conv: bf16 MXU operands
        if out.shape != ref.shape:
            ok = False
        elif not bool(jnp.allclose(out, ref, atol=tol, rtol=tol)):
            ok = False

    print("KERNEL_OK" if ok else "KERNEL_MISMATCH")
</pallas_src>

<mosaic_0001>
module attributes {stable_mosaic.version = 11 : i64} {
  func.func @_pool_kernel(%arg0: i32, %arg1: memref<8x2x4x256xf32, #tpu.memory_space<vmem>>, %arg2: memref<8x4x128xf32, #tpu.memory_space<vmem>>) attributes {dimension_semantics = [#tpu.dimension_semantics<parallel>], iteration_bounds = array<i64: 1>, scalar_prefetch = 0 : i64, scratch_operands = 0 : i64, tpu.core_type = #tpu.core_type<tc>, window_params = [{transform_indices = @transform_0, window_bounds = array<i64: 8, 2, 4, 256>}, {transform_indices = @transform_1, window_bounds = array<i64: 8, 4, 128>}]} {
    %c0 = arith.constant 0 : index
    %c0_0 = arith.constant 0 : index
    %c0_1 = arith.constant 0 : index
    %c0_2 = arith.constant 0 : index
    %0 = vector.load %arg1[%c0, %c0_0, %c0_1, %c0_2] : memref<8x2x4x256xf32, #tpu.memory_space<vmem>>, vector<8x1x4x128xf32>
    %1 = vector.shape_cast %0 : vector<8x1x4x128xf32> to vector<8x4x128xf32>
    %c0_3 = arith.constant 0 : index
    %c0_4 = arith.constant 0 : index
    %c0_5 = arith.constant 0 : index
    %c128 = arith.constant 128 : index
    %2 = vector.load %arg1[%c0_3, %c0_4, %c0_5, %c128] : memref<8x2x4x256xf32, #tpu.memory_space<vmem>>, vector<8x1x4x128xf32>
    %3 = vector.shape_cast %2 : vector<8x1x4x128xf32> to vector<8x4x128xf32>
    %4 = arith.addf %1, %3 : vector<8x4x128xf32>
    %c0_6 = arith.constant 0 : index
    %c1 = arith.constant 1 : index
    %c0_7 = arith.constant 0 : index
    %c0_8 = arith.constant 0 : index
    %5 = vector.load %arg1[%c0_6, %c1, %c0_7, %c0_8] : memref<8x2x4x256xf32, #tpu.memory_space<vmem>>, vector<8x1x4x128xf32>
    %6 = vector.shape_cast %5 : vector<8x1x4x128xf32> to vector<8x4x128xf32>
    %7 = arith.addf %4, %6 : vector<8x4x128xf32>
    %c0_9 = arith.constant 0 : index
    %c1_10 = arith.constant 1 : index
    %c0_11 = arith.constant 0 : index
    %c128_12 = arith.constant 128 : index
    %8 = vector.load %arg1[%c0_9, %c1_10, %c0_11, %c128_12] : memref<8x2x4x256xf32, #tpu.memory_space<vmem>>, vector<8x1x4x128xf32>
    %9 = vector.shape_cast %8 : vector<8x1x4x128xf32> to vector<8x4x128xf32>
    %10 = arith.addf %7, %9 : vector<8x4x128xf32>
    %cst = arith.constant 2.500000e-01 : f32
    %11 = vector.broadcast %cst : f32 to vector<8x4x128xf32>
    %12 = arith.mulf %10, %11 : vector<8x4x128xf32>
    %c0_13 = arith.constant 0 : index
    %c0_14 = arith.constant 0 : index
    %c0_15 = arith.constant 0 : index
    %13 = vector.load %arg2[%c0_13, %c0_14, %c0_15] : memref<8x4x128xf32, #tpu.memory_space<vmem>>, vector<8x4x128xf32>
    tpu.vector_store %arg2[%c0_13, %c0_14, %c0_15], %12 {strides = array<i32>} : memref<8x4x128xf32, #tpu.memory_space<vmem>>, vector<8x4x128xf32>,
    return
  }
  func.func @transform_0(%arg0: i32) -> (i32, i32, i32, i32) {
    %c0_i32 = arith.constant 0 : i32
    %c0_i32_0 = arith.constant 0 : i32
    %c0_i32_1 = arith.constant 0 : i32
    %c0_i32_2 = arith.constant 0 : i32
    return %arg0, %c0_i32, %c0_i32_0, %c0_i32_1 : i32, i32, i32, i32
  }
  func.func @transform_1(%arg0: i32) -> (i32, i32, i32) {
    %c0_i32 = arith.constant 0 : i32
    %c0_i32_0 = arith.constant 0 : i32
    %c0_i32_1 = arith.constant 0 : i32
    return %arg0, %c0_i32, %c0_i32_0 : i32, i32, i32
  }
}

</mosaic_0001>

<bundles_post_ra>
// kernel: tpu_custom_call.1
= control target key start
LH: loop header
LB: loop body
LE: loop exit
PB: predicated region body
PF: predicated region fallthrough
CT: control target
= control target key end

     0   :  { %6 = vsyncpa [#allocation3], 0  ;;  %s207_s0 = inlined_call_operand.hbm [shape: f32[8,2,4,256], index: 0, kind: input, shape index: {}]   ;;  %s208_s1 = inlined_call_operand.hbm [shape: f32[8,4,128], index: 1, kind: output, shape index: {}]  }
   0x1   :  { %7 = vsyncpa [#allocation4], 0  ;;  %s167_s6 = smov [#allocation2]   ;;  %s119_s10 = scalar_lea.hbm %s207_s0, 2048 }
   0x2   :  { %s13_s7 = sshll.u32 %s167_s6, 4  ;;  %p120_p0 = scmp.ne.s32.totalorder %s207_s0, %s119_s10  ;;  %s14_s7 = int_to_ptr.vmem [resolvable:$true] %s13_s7 }
   0x3   :  { %p123_p1 = scmp.lt.u32.totalorder %s119_s10, %s207_s0 }
   0x5   :  { %p125_p2 = pnand %p123_p1, %p120_p0 }
   0x7   :  { %128 = shalt.err (!%p125_p2)
}
   0x8   :  { %s129_s15 = scalar_lea.vmem %s14_s7, 2048  ;;  %p134_p4 = scmp.lt.s32.totalorder %s14_s7, %s14_s7 }
   0x9   :  { %p130_p3 = scmp.ne.s32.totalorder %s14_s7, %s129_s15  ;;  %p135_p5 = scmp.lt.s32.totalorder %s129_s15, %s129_s15 }
   0xb   :  { %p136_p6 = por %p135_p5, %p134_p4 }
   0xd   :  { %p137_p7 = pnand %p136_p6, %p130_p3 }
   0xf   :  { %140 = shalt.err (!%p137_p7)
}
  0x10   :  { %s168_s16 = smov 128   ;;  %s169_s17 = smov 8  }
  0x11   :  { %19 = dma.hbm_to_vmem [thread:$0]  %s207_s0, 2048, %s14_s7, [#allocation3], %s168_s16, %s168_s16, %s169_s17  }
  0x12   :  { %163 = dma.done.wait [#allocation3], 2048  }
  0x13   :  { %164 = vsyncadd [#allocation3], 4294965248  ;;  %v23_v0 = vld [vmem:[#allocation2] sm:$0xf]  ;;  %v31_v1 = vld [vmem:[#allocation2 + $0x4] sm:$0xf] }
  0x14   :  { %v48_v2 = vld [vmem:[#allocation2 + $0x8] sm:$0xf]  ;;  %v39_v3 = vadd.f32 %v31_v1, %v23_v0  ;;  %v64_v4 = vld [vmem:[#allocation2 + $0xc] sm:$0xf]  ;;  %v24_v5 = vld [vmem:[#allocation2 + $0x10] sm:$0xf] }
  0x15   :  { %v32_v6 = vld [vmem:[#allocation2 + $0x14] sm:$0xf]  ;;  %v49_v8 = vld [vmem:[#allocation2 + $0x18] sm:$0xf]  ;;  %v65_v9 = vld [vmem:[#allocation2 + $0x1c] sm:$0xf] }
  0x16   :  { %v40_v7 = vadd.f32 %v32_v6, %v24_v5  ;;  %v25_v10 = vld [vmem:[#allocation2 + $0x20] sm:$0xf]  ;;  %v56_v11 = vadd.f32 %v48_v2, %v39_v3  ;;  %v33_v12 = vld [vmem:[#allocation2 + $0x24] sm:$0xf]  ;;  %v50_v13 = vld [vmem:[#allocation2 + $0x28] sm:$0xf] }
  0x17   :  { %v66_v14 = vld [vmem:[#allocation2 + $0x2c] sm:$0xf]  ;;  %v41_v16 = vadd.f32 %v33_v12, %v25_v10  ;;  %v26_v17 = vld [vmem:[#allocation2 + $0x30] sm:$0xf]  ;;  %v34_v18 = vld [vmem:[#allocation2 + $0x34] sm:$0xf] }
  0x18   :  { %v57_v15 = vadd.f32 %v49_v8, %v40_v7  ;;  %v51_v19 = vld [vmem:[#allocation2 + $0x38] sm:$0xf]  ;;  %v72_v20 = vadd.f32 %v64_v4, %v56_v11  ;;  %v42_v21 = vadd.f32 %v34_v18, %v26_v17  ;;  %v67_v22 = vld [vmem:[#allocation2 + $0x3c] sm:$0xf]  ;;  %v27_v23 = vld [vmem:[#allocation2 + $0x40] sm:$0xf] }
  0x19   :  { %v35_v24 = vld [vmem:[#allocation2 + $0x44] sm:$0xf]  ;;  %v58_v26 = vadd.f32 %v50_v13, %v41_v16  ;;  %v52_v28 = vld [vmem:[#allocation2 + $0x48] sm:$0xf]  ;;  %v68_v29 = vld [vmem:[#allocation2 + $0x4c] sm:$0xf] }
  0x1a   :  { %v73_v25 = vadd.f32 %v65_v9, %v57_v15  ;;  %v43_v27 = vadd.f32 %v35_v24, %v27_v23  ;;  %v28_v30 = vld [vmem:[#allocation2 + $0x50] sm:$0xf]  ;;  %v80_v31 = vmul.f32 0.25, %v72_v20  ;;  %v59_v32 = vadd.f32 %v51_v19, %v42_v21  ;;  %v36_v33 = vld [vmem:[#allocation2 + $0x54] sm:$0xf]  ;;  %s170_s0 = smov [#allocation5]  }
  0x1b   :  { %v53_v34 = vld [vmem:[#allocation2 + $0x58] sm:$0xf]  ;;  %v74_v36 = vadd.f32 %v66_v14, %v58_v26  ;;  %v44_v38 = vadd.f32 %v36_v33, %v28_v30  ;;  %v29_v39 = vld [vmem:[#allocation2 + $0x60] sm:$0xf]  ;;  %v69_v41 = vld [vmem:[#allocation2 + $0x5c] sm:$0xf] }
  0x1c   :  { %v81_v35 = vmul.f32 0.25, %v73_v25  ;;  %v60_v37 = vadd.f32 %v52_v28, %v43_v27  ;;  %88 = vst [vmem:[#allocation5] sm:$0xf] %v80_v31  ;;  %v75_v40 = vadd.f32 %v67_v22, %v59_v32  ;;  %v37_v42 = vld [vmem:[#allocation2 + $0x64] sm:$0xf]  ;;  %s101_s20 = sshll.u32 %s170_s0, 4  ;;  %s102_s20 = int_to_ptr.vmem [resolvable:$true] %s101_s20 }
  0x1d   :  { %v54_v43 = vld [vmem:[#allocation2 + $0x68] sm:$0xf]  ;;  %v82_v44 = vmul.f32 0.25, %v74_v36  ;;  %v61_v46 = vadd.f32 %v53_v34, %v44_v38  ;;  %v45_v47 = vadd.f32 %v37_v42, %v29_v39  ;;  %v30_v48 = vld [vmem:[#allocation2 + $0x70] sm:$0xf]  ;;  %s141_s21 = scalar_lea.vmem %s102_s20, 512  ;;  %p146_p9 = scmp.lt.s32.totalorder %s102_s20, %s102_s20 }
  0x1e   :  { %89 = vst [vmem:[#allocation5 + $0x4] sm:$0xf] %v81_v35  ;;  %v76_v45 = vadd.f32 %v68_v29, %v60_v37  ;;  %v38_v49 = vld [vmem:[#allocation2 + $0x74] sm:$0xf]  ;;  %v83_v50 = vmul.f32 0.25, %v75_v40  ;;  %p142_p8 = scmp.ne.s32.totalorder %s102_s20, %s141_s21  ;;  %p147_p10 = scmp.lt.s32.totalorder %s141_s21, %s141_s21 }
  0x1f   :  { %v70_v51 = vld [vmem:[#allocation2 + $0x6c] sm:$0xf]  ;;  %v46_v52 = vadd.f32 %v38_v49, %v30_v48  ;;  %v55_v53 = vld [vmem:[#allocation2 + $0x78] sm:$0xf]  ;;  %90 = vst [vmem:[#allocation5 + $0x8] sm:$0xf] %v82_v44  ;;  %v77_v55 = vadd.f32 %v69_v41, %v61_v46  ;;  %v62_v56 = vadd.f32 %v54_v43, %v45_v47 }
  0x20   :  { %v84_v54 = vmul.f32 0.25, %v76_v45  ;;  %v71_v57 = vld [vmem:[#allocation2 + $0x7c] sm:$0xf]  ;;  %91 = vst [vmem:[#allocation5 + $0xc] sm:$0xf] %v83_v50  ;;  %p148_p11 = por %p147_p10, %p146_p9 }
  0x21   :  { %v63_v58 = vadd.f32 %v55_v53, %v46_v52  ;;  %v85_v59 = vmul.f32 0.25, %v77_v55  ;;  %v78_v60 = vadd.f32 %v70_v51, %v62_v56 }
  0x22   :  { %92 = vst [vmem:[#allocation5 + $0x10] sm:$0xf] %v84_v54  ;;  %p149_p12 = pnand %p148_p11, %p142_p8 }
  0x23   :  { %v79_v61 = vadd.f32 %v71_v57, %v63_v58  ;;  %93 = vst [vmem:[#allocation5 + $0x14] sm:$0xf] %v85_v59  ;;  %v86_v62 = vmul.f32 0.25, %v78_v60 }
  0x25   :  { %v87_v63 = vmul.f32 0.25, %v79_v61  ;;  %94 = vst [vmem:[#allocation5 + $0x18] sm:$0xf] %v86_v62 }
  0x27   :  { %95 = vst [vmem:[#allocation5 + $0x1c] sm:$0xf] %v87_v63 }
  0x28   :  { %152 = shalt.err (!%p149_p12)
}
  0x29   :  { %s153_s24 = scalar_lea.hbm %s208_s1, 512 }
  0x2a   :  { %p154_p13 = scmp.ne.s32.totalorder %s208_s1, %s153_s24  ;;  %p157_p0 = scmp.lt.u32.totalorder %s153_s24, %s208_s1 }
  0x2c   :  { %p159_p1 = pnand %p157_p0, %p154_p13 }
  0x2e   :  { %162 = shalt.err (!%p159_p1)
}
  0x2f   :  { %s171_s29 = smov 64   ;;  %s172_s30 = smov 4  }
  0x30   :  { %107 = dma.vmem_to_hbm [thread:$0]  %s102_s20, 512, %s208_s1, [#allocation4], %s171_s29, %s171_s29, %s172_s30  }
  0x31   :  { %165 = dma.done.wait [#allocation4], 512  }
  0x32   :  { %166 = vsyncadd [#allocation4], 4294966784 }
  0x33   :  { %111 = vsyncpa [#allocation3], 1 }
  0x34   :  { %112 = vsyncpa [#allocation4], 1 }

</bundles_post_ra>
